<compile_context>
chip_gen: v5e
topology: v5e:2x2
jax: 0.10.0
libtpu: 0.0.40
codegen_flags: <defaults>
</compile_context>

<pallas_src>
import functools
import math

import jax
import jax.numpy as jnp
from jax.experimental import pallas as pl
from jax.experimental.pallas import tpu as pltpu


# ---------------------------------------------------------------------------
# pe buffer (matches the PyTorch __init__ math), kept as [max_len, 1, d_model]
# exactly like the registered PyTorch buffer.
# ---------------------------------------------------------------------------
def make_positional_encoding(d_model: int, max_len: int = 5000) -> jnp.ndarray:
    position = jnp.arange(max_len, dtype=jnp.float32)[:, None]            # [L, 1]
    div_term = jnp.exp(
        jnp.arange(0, d_model, 2, dtype=jnp.float32) * (-math.log(10000.0) / d_model)
    )                                                                     # [D/2]
    pe = jnp.zeros((max_len, d_model), dtype=jnp.float32)
    pe = pe.at[:, 0::2].set(jnp.sin(position * div_term))
    pe = pe.at[:, 1::2].set(jnp.cos(position * div_term))
    return pe[:, None, :]                                                 # [L, 1, D]


# ---------------------------------------------------------------------------
# Kernel
# ---------------------------------------------------------------------------
def _pe_kernel(*refs, p, dropout):
    """Ref layout depends on `dropout`:
         "none": (x_ref, pe_ref, o_ref)
         "hw"  : (seed_ref, x_ref, pe_ref, o_ref)   TPU hardware PRNG
         "bits": (x_ref, pe_ref, bits_ref, o_ref)   precomputed random bits
       Blocks: x/o/bits (ts, B, D); pe (ts, 1, D); seed (1,) in SMEM.
    """
    if dropout == "hw":
        seed_ref, x_ref, pe_ref, o_ref = refs
    elif dropout == "bits":
        x_ref, pe_ref, bits_ref, o_ref = refs
    else:
        x_ref, pe_ref, o_ref = refs

    x = x_ref[...]                     # (ts, B, D); compute in x.dtype (no f32 upcast)
    y = x + pe_ref[...]                # pe block (ts, 1, D) broadcasts over batch

    if dropout != "none":
        if dropout == "hw":
            # Multi-word seed (user seed, tile index): per-tile streams are
            # independent and do not alias across neighbouring user seeds.
            pltpu.prng_seed(seed_ref[0], pl.program_id(0))
            bits = pltpu.bitcast(pltpu.prng_random_bits(y.shape), jnp.uint32)
        else:
            bits = bits_ref[...]
        # Inverted dropout, integer threshold: P(drop) = threshold / 2^32 ~= p.
        # (p very close to 1.0 is pathological: 1/(1-p) blows up, as in PyTorch.)
        threshold = jnp.uint32(min(int(round(p * 2.0 ** 32)), 2 ** 32 - 1))
        inv_keep = jnp.asarray(1.0 / (1.0 - p), dtype=y.dtype)
        y = y * jnp.where(bits >= threshold, inv_keep, jnp.zeros_like(inv_keep))

    o_ref[...] = y.astype(o_ref.dtype)


# ---------------------------------------------------------------------------
# Tile sizing (per-generation VMEM-aware) and wrapper
# ---------------------------------------------------------------------------
_X_BLOCK_TARGET_BYTES = 4 * 1024 * 1024    # ~2-4 MiB x blocks: past the roofline knee
_FALLBACK_VMEM_BYTES = 64 * 1024 * 1024    # conservative (v7x per-TensorCore VMEM)


def _round_up(n: int, m: int) -> int:
    return ((n + m - 1) // m) * m


def _vmem_capacity_bytes() -> int:
    try:
        return int(pltpu.get_tpu_info().vmem_capacity_bytes)
    except Exception:
        return _FALLBACK_VMEM_BYTES


def _choose_seq_tile(S, B, D, itemsize, dropout_hw, vmem_cap):
    # dtype sublane packing granularity: 8 rows f32, 16 bf16, 32 int8/fp8.
    gran = max(8, 32 // int(itemsize))
    s_full = _round_up(S, gran)

    # Per-sequence-row VMEM cost of one grid step: double-buffered x-in, out
    # and pe blocks, plus the single-buffered in-kernel temporaries (y, and
    # the uint32 PRNG bits on the hw-dropout path -- 4 B/elem).
    row_x = B * D * itemsize
    row_pe = D * itemsize
    row_tmp = B * D * itemsize + (B * D * 4 if dropout_hw else 0)
    per_row = 2 * (2 * row_x + row_pe) + row_tmp

    budget = min(vmem_cap * 2 // 5, 16 * 1024 * 1024)   # <= ~40% of physical VMEM
    ts = min(_X_BLOCK_TARGET_BYTES // max(row_x, 1), budget // max(per_row, 1))
    ts = max(gran, (ts // gran) * gran)

    # Keep >= 4 grid steps when S allows it: the pipeline gets steps to
    # overlap and v7x's two TensorCores can split the "parallel" axis
    # (free on v7x, neutral on v5e/v6e).
    ts = min(ts, max(gran, _round_up(-(-S // 4), gran)))
    return int(min(ts, s_full))


def positional_encoding_forward(x, pe, *, p: float = 0.1, training: bool = True,
                                seed: int = 0):
    """PyTorch-convention entry point.
       x: [seq_len, batch, d_model]; pe: [max_len, 1, d_model] (the buffer)."""
    S, B, D = x.shape
    dtype = x.dtype
    pe_c = pe.astype(dtype)                        # stream pe in the activation dtype

    dropout_on = bool(training) and float(p) > 0.0
    use_hw_prng = dropout_on and jax.default_backend() == "tpu"
    dropout = "hw" if use_hw_prng else ("bits" if dropout_on else "none")

    vmem_cap = _vmem_capacity_bytes()
    ts = _choose_seq_tile(S, B, D, dtype.itemsize, dropout == "hw", vmem_cap)
    grid = (pl.cdiv(S, ts),)

    # Native-layout blocks: (ts, B, D) -- last two dims equal the full array
    # dims, so the (8,128) rule is satisfied without any wrapper transpose.
    x_spec = pl.BlockSpec((ts, B, D), lambda i: (i, 0, 0))
    pe_spec = pl.BlockSpec((ts, 1, D), lambda i: (i, 0, 0))
    # If profiling shows exposed DMA on the x stream, use instead:
    #   pl.BlockSpec((ts, B, D), lambda i: (i, 0, 0), pipeline_mode=pl.Buffered(3))

    in_specs = []
    args = []
    if dropout == "hw":
        in_specs.append(pl.BlockSpec(memory_space=pltpu.MemorySpace.SMEM))
        args.append(jnp.asarray([seed], dtype=jnp.int32))
    in_specs += [x_spec, pe_spec]
    args += [x, pe_c]
    if dropout == "bits":
        # Off-TPU fallback (interpret mode / CPU): pltpu.prng_seed has no
        # lowering there, so random bits are generated host-side and streamed.
        bits = jax.random.bits(jax.random.PRNGKey(seed), (S, B, D), dtype=jnp.uint32)
        in_specs.append(pl.BlockSpec((ts, B, D), lambda i: (i, 0, 0)))
        args.append(bits)

    kernel = functools.partial(_pe_kernel, p=float(p), dropout=dropout)
    vmem_limit = int(min(vmem_cap // 2, 48 * 1024 * 1024))

    return pl.pallas_call(
        kernel,
        out_shape=jax.ShapeDtypeStruct((S, B, D), dtype),
        grid=grid,
        in_specs=in_specs,
        out_specs=pl.BlockSpec((ts, B, D), lambda i: (i, 0, 0)),
        compiler_params=pltpu.CompilerParams(
            dimension_semantics=("parallel",),
            vmem_limit_bytes=vmem_limit,
        ),
    )(*args)


# ---------------------------------------------------------------------------
# Self-test
# ---------------------------------------------------------------------------
if __name__ == "__main__":
    d_model = 32
    seq_len = 8
    batch = 2
    max_len = 5000
    p = 0.1

    key = jax.random.PRNGKey(0)
    x = jax.random.normal(key, (seq_len, batch, d_model), dtype=jnp.float32)
    pe = make_positional_encoding(d_model, max_len)               # [max_len, 1, D]
    ref = x + pe[:seq_len]                                        # broadcast over batch

    # Eval mode (dropout disabled): must equal x + pe[:S].
    y_eval = jax.block_until_ready(positional_encoding_forward(x, pe, p=p, training=False))
    assert y_eval.shape == x.shape
    assert jnp.allclose(y_eval, ref, atol=1e-5, rtol=1e-5), "eval mismatch vs reference"

    # Training mode (inverted dropout): survivors equal ref / (1-p), rest are 0.
    y_train = jax.block_until_ready(
        positional_encoding_forward(x, pe, p=p, training=True, seed=0))
    assert y_train.shape == x.shape
    kept = y_train != 0.0
    assert jnp.allclose(jnp.where(kept, y_train, 0.0),
                        jnp.where(kept, ref / (1.0 - p), 0.0),
                        atol=1e-5, rtol=1e-5), "train mismatch vs scaled reference"

    # Ragged sequence length (S not a multiple of the tile granularity):
    # exercises the partial-block masking path.
    seq_len2 = 13
    x2 = jax.random.normal(jax.random.PRNGKey(1), (seq_len2, batch, d_model),
                           dtype=jnp.float32)
    y2 = jax.block_until_ready(positional_encoding_forward(x2, pe, p=p, training=False))
    ref2 = x2 + pe[:seq_len2]
    assert jnp.allclose(y2, ref2, atol=1e-5, rtol=1e-5), "ragged-S mismatch vs reference"

    print("KERNEL_OK")
</pallas_src>

<mosaic_0001>
module attributes {stable_mosaic.version = 11 : i64} {
  func.func @_pe_kernel(%arg0: i32, %arg1: memref<8x2x32xf32, #tpu.memory_space<vmem>>, %arg2: memref<8x1x32xf32, #tpu.memory_space<vmem>>, %arg3: memref<8x2x32xf32, #tpu.memory_space<vmem>>) attributes {dimension_semantics = [#tpu.dimension_semantics<parallel>], iteration_bounds = array<i64: 1>, scalar_prefetch = 0 : i64, scratch_operands = 0 : i64, tpu.core_type = #tpu.core_type<tc>, window_params = [{transform_indices = @transform_0, window_bounds = array<i64: 8, 2, 32>}, {transform_indices = @transform_1, window_bounds = array<i64: 8, 1, 32>}, {transform_indices = @transform_2, window_bounds = array<i64: 8, 2, 32>}]} {
    %c0 = arith.constant 0 : index
    %c0_0 = arith.constant 0 : index
    %c0_1 = arith.constant 0 : index
    %0 = vector.load %arg1[%c0, %c0_0, %c0_1] : memref<8x2x32xf32, #tpu.memory_space<vmem>>, vector<8x2x32xf32>
    %c0_2 = arith.constant 0 : index
    %c0_3 = arith.constant 0 : index
    %c0_4 = arith.constant 0 : index
    %1 = vector.load %arg2[%c0_2, %c0_3, %c0_4] : memref<8x1x32xf32, #tpu.memory_space<vmem>>, vector<8x1x32xf32>
    %2 = vector.broadcast %1 : vector<8x1x32xf32> to vector<8x2x32xf32>
    %3 = arith.addf %0, %2 : vector<8x2x32xf32>
    %c0_5 = arith.constant 0 : index
    %c0_6 = arith.constant 0 : index
    %c0_7 = arith.constant 0 : index
    %4 = vector.load %arg3[%c0_5, %c0_6, %c0_7] : memref<8x2x32xf32, #tpu.memory_space<vmem>>, vector<8x2x32xf32>
    tpu.vector_store %arg3[%c0_5, %c0_6, %c0_7], %3 {strides = array<i32>} : memref<8x2x32xf32, #tpu.memory_space<vmem>>, vector<8x2x32xf32>,
    return
  }
  func.func @transform_0(%arg0: i32) -> (i32, i32, i32) {
    %c0_i32 = arith.constant 0 : i32
    %c0_i32_0 = arith.constant 0 : i32
    %c0_i32_1 = arith.constant 0 : i32
    return %arg0, %c0_i32, %c0_i32_0 : i32, i32, i32
  }
  func.func @transform_1(%arg0: i32) -> (i32, i32, i32) {
    %c0_i32 = arith.constant 0 : i32
    %c0_i32_0 = arith.constant 0 : i32
    %c0_i32_1 = arith.constant 0 : i32
    return %arg0, %c0_i32, %c0_i32_0 : i32, i32, i32
  }
  func.func @transform_2(%arg0: i32) -> (i32, i32, i32) {
    %c0_i32 = arith.constant 0 : i32
    %c0_i32_0 = arith.constant 0 : i32
    %c0_i32_1 = arith.constant 0 : i32
    return %arg0, %c0_i32, %c0_i32_0 : i32, i32, i32
  }
}

</mosaic_0001>

<bundles_post_ra>
// kernel: tpu_custom_call.1
= control target key start
LH: loop header
LB: loop body
LE: loop exit
PB: predicated region body
PF: predicated region fallthrough
CT: control target
= control target key end

     0   :  { %vm60_vm0 = vcmask 254976   ;;  %s201_s0 = inlined_call_operand.vmem [shape: f32[8,2,32], index: 0, kind: input, shape index: {}]   ;;  %s202_s1 = inlined_call_operand.vmem [shape: f32[5000,1,32], index: 1, kind: input, shape index: {}]   ;;  %s203_s2 = inlined_call_operand.hbm [shape: f32[8,2,32], index: 2, kind: output, shape index: {}]  }
   0x1   :  { %v12_v0 = vld [vmem:[%s201_s0] sm:$0x3]  ;;  %v13_v2 = vld [vmem:[%s201_s0 + $0x2] sm:$0x3]  ;;  %v14_v5 = vld [vmem:[%s201_s0 + $0x4] sm:$0x3] }
   0x2   :  { %v90_v1 = vld [vmem:[%s202_s1] ss:$0 sm:$0xff]  ;;  %v91_v4 = vld [vmem:[%s202_s1 + $0x1] ss:$0 sm:$0xff]  ;;  %v92_v6 = vld [vmem:[%s202_s1 + $0x2] ss:$0 sm:$0xff] }
   0x3   :  { %v52_v3 = vadd.f32 %v90_v1, %v12_v0  ;;  %v15_v7 = vld [vmem:[%s201_s0 + $0x6] sm:$0x3]  ;;  %v53_v8 = vadd.f32 %v91_v4, %v13_v2  ;;  %v93_v9 = vld [vmem:[%s202_s1 + $0x3] ss:$0 sm:$0xff]  ;;  %v16_v10 = vld [vmem:[%s201_s0 + $0x8] sm:$0x3]  ;;  %v54_v11 = vadd.f32 %v92_v6, %v14_v5 }
   0x4   :  { %v94_v12 = vld [vmem:[%s202_s1 + $0x4] ss:$0 sm:$0xff]  ;;  %v17_v13 = vld [vmem:[%s201_s0 + $0xa] sm:$0x3]  ;;  %v55_v14 = vadd.f32 %v93_v9, %v15_v7  ;;  %v95_v15 = vld [vmem:[%s202_s1 + $0x5] ss:$0 sm:$0xff] }
   0x5   :  { %61 = vst.msk [vmem:[#allocation2] sm:$0x3] %vm60_vm0, %v52_v3  ;;  %v56_v16 = vadd.f32 %v94_v12, %v16_v10  ;;  %v18_v17 = vld [vmem:[%s201_s0 + $0xc] sm:$0x3]  ;;  %v57_v18 = vadd.f32 %v95_v15, %v17_v13  ;;  %v96_v19 = vld [vmem:[%s202_s1 + $0x6] ss:$0 sm:$0xff] }
   0x6   :  { %62 = vst.msk [vmem:[#allocation2 + $0x2] sm:$0x3] %vm60_vm0, %v53_v8  ;;  %v19_v20 = vld [vmem:[%s201_s0 + $0xe] sm:$0x3]  ;;  %v97_v21 = vld [vmem:[%s202_s1 + $0x7] ss:$0 sm:$0xff]  ;;  %v58_v22 = vadd.f32 %v96_v19, %v18_v17 }
   0x7   :  { %63 = vst.msk [vmem:[#allocation2 + $0x4] sm:$0x3] %vm60_vm0, %v54_v11 }
   0x8   :  { %64 = vst.msk [vmem:[#allocation2 + $0x6] sm:$0x3] %vm60_vm0, %v55_v14 }
   0x9   :  { %65 = vst.msk [vmem:[#allocation2 + $0x8] sm:$0x3] %vm60_vm0, %v56_v16 }
   0xa   :  { %66 = vst.msk [vmem:[#allocation2 + $0xa] sm:$0x3] %vm60_vm0, %v57_v18 }
   0xb   :  { %7 = vsyncpa [#allocation3], 0  ;;  %s124_s13 = smov [#allocation2]   ;;  %s75_s17 = sshll.u32 %s203_s2, 4  ;;  %v59_v23 = vadd.f32 %v97_v21, %v19_v20  ;;  %67 = vst.msk [vmem:[#allocation2 + $0xc] sm:$0x3] %vm60_vm0, %v58_v22  ;;  %s76_s17 = int_to_ptr.hbm [resolvable:$true] %s75_s17 }
   0xc   :  { %s73_s14 = sshll.u32 %s124_s13, 4  ;;  %s125_s0 = smov 32   ;;  %s74_s14 = int_to_ptr.vmem [resolvable:$true] %s73_s14 }
   0xd   :  { %68 = vst.msk [vmem:[#allocation2 + $0xe] sm:$0x3] %vm60_vm0, %v59_v23  ;;  %s126_s18 = smov 2  }
   0xe   :  { %81 = dma.vmem_to_hbm [thread:$0]  %s74_s14, 256, %s76_s17, [#allocation3], %s125_s0, %s125_s0, %s126_s18  }
   0xf   :  { %122 = dma.done.wait [#allocation3], 256  }
  0x10   :  { %123 = vsyncadd [#allocation3], 4294967040 }
  0x11   :  { %86 = vsyncpa [#allocation3], 1 }

</bundles_post_ra>
